<compile_context>
chip_gen: v7x
topology: tpu7x:2x2x1
jax: 0.10.0
libtpu: 0.0.40
codegen_flags: <defaults>
</compile_context>

<pallas_src>
import functools

import jax
import jax.numpy as jnp
from jax import lax
from jax.experimental import pallas as pl
from jax.experimental.pallas import tpu as pltpu

raw_text = ('We are about to study the idea of a computational process.\n'
            'Computational processes are abstract beings that inhabit computers.\n'
            'As they evolve, processes manipulate other abstract things called data.\n'
            'The evolution of a process is directed by a pattern of rules\n'
            'called a program. People create programs to direct processes. In effect,\n'
            'we conjure the spirits of the computer with our spells.').split()

vocab = sorted(set(raw_text))
VOCAB_SIZE = len(vocab)
EMBEDDING_DIM = 16
CONTEXT_SIZE = 2
N_CTX = 2 * CONTEXT_SIZE  # number of context word indices fed to forward()


@functools.partial(jax.jit, static_argnames=("tb",))
def cbow_forward(indices, emb_table, lin_w, lin_b, bias, *, tb=None):
    """indices: (N_CTX,) or (B, N_CTX) int; returns (1, V) or (B, V) log-probs."""
    idx = jnp.atleast_2d(indices).astype(jnp.int32)        # (B, N_CTX)
    B, n_ctx = idx.shape
    V, D = emb_table.shape

    Vp = pl.cdiv(V, 128) * 128                             # lane-dense vocab (49 -> 128)
    if tb is None:
        # One fat grid step for small batches (multiple of 8 for sublane alignment);
        # cap the tile so very large batches still pipeline over the grid.
        tb = min(max(pl.cdiv(B, 8) * 8, 8), 256)
    Bp = pl.cdiv(B, tb) * tb                               # whole number of batch tiles

    if Bp != B:
        idx = jnp.pad(idx, ((0, Bp - B), (0, 0)))          # padded rows count word 0; sliced off later

    # Lane-dense padded operands. Padded vocab rows are zero -> zero logits.
    emb_p = jnp.pad(emb_table, ((0, Vp - V), (0, 0))).astype(jnp.float32)   # (Vp, D)
    w_p = jnp.pad(lin_w, ((0, Vp - V), (0, 0))).astype(jnp.float32)         # (Vp, D)

    # Fold linear bias + extra bias + padded-column mask into one vector.
    lin_b_p = jnp.pad(lin_b.astype(jnp.float32), (0, Vp - V))
    bias_p = jnp.pad(bias.reshape(-1).astype(jnp.float32), (0, Vp - V))
    col_is_real = jnp.arange(Vp) < V
    combined_bias = jnp.where(col_is_real, lin_b_p + bias_p, -1e30).reshape(1, Vp)

    def kernel(idx_ref, emb_ref, w_ref, bias_ref, out_ref):
        # idx_ref:  (tb, n_ctx) int32   (context word ids for this batch tile)
        # emb_ref:  (Vp, D)    f32      (padded embedding table, VMEM-resident)
        # w_ref:    (Vp, D)    f32      (padded linear weight, natural layout)
        # bias_ref: (1, Vp)    f32      (lin_b + bias, -1e30 in padded columns)
        # out_ref:  (tb, Vp)   f32
        ids = idx_ref[...]                                          # (tb, n_ctx)
        iota_v = lax.broadcasted_iota(jnp.int32, (tb, Vp), 1)       # lane index

        # Multi-hot context-count matrix: counts[b, v] = #occurrences of word v
        # in window b. n_ctx vectorized compares on the VPU (no scalar gather).
        counts = jnp.zeros((tb, Vp), jnp.float32)
        for c in range(n_ctx):                                      # static, tiny
            counts = counts + (ids[:, c:c + 1] == iota_v).astype(jnp.float32)

        # Embedding lookup + sum over the context window == counts @ E  (MXU).
        cbow = jnp.dot(counts, emb_ref[...],
                       preferred_element_type=jnp.float32)          # (tb, D)

        # Linear layer: contract on D against the (Vp, D) weight (MXU), add
        # the pre-folded biases (padded columns land at -1e30).
        logits = lax.dot_general(
            cbow, w_ref[...],
            dimension_numbers=(((1,), (1,)), ((), ())),
            preferred_element_type=jnp.float32)                     # (tb, Vp)
        logits = logits + bias_ref[...]

        # Numerically stable log_softmax along dim=1; padded columns underflow
        # to exp(...) == 0 and cannot perturb the real columns.
        m = jnp.max(logits, axis=1, keepdims=True)
        shifted = logits - m
        lse = jnp.log(jnp.sum(jnp.exp(shifted), axis=1, keepdims=True))
        out_ref[...] = shifted - lse

    grid_spec = pltpu.PrefetchScalarGridSpec(
        num_scalar_prefetch=0,
        grid=(Bp // tb,),
        in_specs=[
            pl.BlockSpec((tb, n_ctx), lambda i: (i, 0)),   # context indices (per tile)
            pl.BlockSpec((Vp, D), lambda i: (0, 0)),       # embedding table (resident)
            pl.BlockSpec((Vp, D), lambda i: (0, 0)),       # linear weight (resident)
            pl.BlockSpec((1, Vp), lambda i: (0, 0)),       # folded bias (resident)
        ],
        out_specs=pl.BlockSpec((tb, Vp), lambda i: (i, 0)),
    )

    out = pl.pallas_call(
        kernel,
        out_shape=jax.ShapeDtypeStruct((Bp, Vp), jnp.float32),
        grid_spec=grid_spec,
        compiler_params=pltpu.CompilerParams(dimension_semantics=("parallel",)),
    )(idx, emb_p, w_p, combined_bias)

    return out[:B, :V]


def cbow_reference(indices, emb_table, lin_w, lin_b, bias):
    idx = jnp.atleast_2d(indices)
    embeds = emb_table[idx]                 # (B, N_CTX, D)
    cbow = jnp.sum(embeds, axis=1)          # (B, D)
    A = cbow @ lin_w.T + lin_b              # (B, V)
    out = A + bias                          # (1, V) broadcasts over B
    return jax.nn.log_softmax(out, axis=1)


if __name__ == "__main__":
    key = jax.random.PRNGKey(0)
    k_emb, k_w, k_b, k_bias, k_idx = jax.random.split(key, 5)

    # Deterministic synthetic parameters (shapes follow the nn.Module __init__).
    emb_table = jax.random.normal(k_emb, (VOCAB_SIZE, EMBEDDING_DIM), jnp.float32)
    lin_w = jax.random.normal(k_w, (VOCAB_SIZE, EMBEDDING_DIM), jnp.float32) * 0.1
    lin_b = jax.random.normal(k_b, (VOCAB_SIZE,), jnp.float32) * 0.1
    bias = jax.random.normal(k_bias, (1, VOCAB_SIZE), jnp.float32)

    # Batched context windows (B windows of N_CTX indices each) -> one grid step.
    B = 16
    indices = jax.random.randint(k_idx, (B, N_CTX), 0, VOCAB_SIZE, jnp.int32)

    out = jax.block_until_ready(cbow_forward(indices, emb_table, lin_w, lin_b, bias))
    ref = cbow_reference(indices, emb_table, lin_w, lin_b, bias)
    assert out.shape == (B, VOCAB_SIZE)
    assert jnp.allclose(out, ref, atol=2e-5, rtol=1e-5), "batched mismatch vs reference"

    # Single context window — the original module's forward() signature exactly.
    single = indices[0]
    out1 = jax.block_until_ready(cbow_forward(single, emb_table, lin_w, lin_b, bias))
    ref1 = cbow_reference(single, emb_table, lin_w, lin_b, bias)
    assert out1.shape == (1, VOCAB_SIZE)
    assert jnp.allclose(out1, ref1, atol=2e-5, rtol=1e-5), "single-window mismatch vs reference"

    print("KERNEL_OK")
</pallas_src>

<mosaic_0001>
module attributes {stable_mosaic.version = 11 : i64} {
  func.func @kernel(%arg0: i32, %arg1: memref<16x4xi32, #tpu.memory_space<vmem>>, %arg2: memref<128x16xf32, #tpu.memory_space<vmem>>, %arg3: memref<128x16xf32, #tpu.memory_space<vmem>>, %arg4: memref<1x128xf32, #tpu.memory_space<vmem>>, %arg5: memref<16x128xf32, #tpu.memory_space<vmem>>) attributes {dimension_semantics = [#tpu.dimension_semantics<parallel>], iteration_bounds = array<i64: 1>, scalar_prefetch = 0 : i64, scratch_operands = 0 : i64, tpu.core_type = #tpu.core_type<tc>, window_params = [{transform_indices = @transform_0, window_bounds = array<i64: 16, 4>}, {pipeline_mode = #tpu.pipeline_mode<synchronous>, transform_indices = @transform_1, window_bounds = array<i64: 128, 16>}, {pipeline_mode = #tpu.pipeline_mode<synchronous>, transform_indices = @transform_2, window_bounds = array<i64: 128, 16>}, {pipeline_mode = #tpu.pipeline_mode<synchronous>, transform_indices = @transform_3, window_bounds = array<i64: 1, 128>}, {transform_indices = @transform_4, window_bounds = array<i64: 16, 128>}]} {
    %c0 = arith.constant 0 : index
    %c0_0 = arith.constant 0 : index
    %0 = vector.load %arg1[%c0, %c0_0] : memref<16x4xi32, #tpu.memory_space<vmem>>, vector<16x4xi32>
    %1 = tpu.iota {dimensions = array<i32: 1>} : vector<16x128xi32>
    %cst = arith.constant 0.000000e+00 : f32
    %2 = vector.broadcast %cst : f32 to vector<16x128xf32>
    %3 = vector.extract_strided_slice %0 {offsets = [0, 0], sizes = [16, 1], strides = [1, 1]} : vector<16x4xi32> to vector<16x1xi32>
    %4 = vector.broadcast %3 : vector<16x1xi32> to vector<16x128xi32>
    %5 = arith.cmpi eq, %4, %1 : vector<16x128xi32>
    %6 = arith.extui %5 : vector<16x128xi1> to vector<16x128xi32>
    %7 = arith.sitofp %6 : vector<16x128xi32> to vector<16x128xf32>
    %8 = arith.addf %2, %7 : vector<16x128xf32>
    %9 = vector.extract_strided_slice %0 {offsets = [0, 1], sizes = [16, 1], strides = [1, 1]} : vector<16x4xi32> to vector<16x1xi32>
    %10 = vector.broadcast %9 : vector<16x1xi32> to vector<16x128xi32>
    %11 = arith.cmpi eq, %10, %1 : vector<16x128xi32>
    %12 = arith.extui %11 : vector<16x128xi1> to vector<16x128xi32>
    %13 = arith.sitofp %12 : vector<16x128xi32> to vector<16x128xf32>
    %14 = arith.addf %8, %13 : vector<16x128xf32>
    %15 = vector.extract_strided_slice %0 {offsets = [0, 2], sizes = [16, 1], strides = [1, 1]} : vector<16x4xi32> to vector<16x1xi32>
    %16 = vector.broadcast %15 : vector<16x1xi32> to vector<16x128xi32>
    %17 = arith.cmpi eq, %16, %1 : vector<16x128xi32>
    %18 = arith.extui %17 : vector<16x128xi1> to vector<16x128xi32>
    %19 = arith.sitofp %18 : vector<16x128xi32> to vector<16x128xf32>
    %20 = arith.addf %14, %19 : vector<16x128xf32>
    %21 = vector.extract_strided_slice %0 {offsets = [0, 3], sizes = [16, 1], strides = [1, 1]} : vector<16x4xi32> to vector<16x1xi32>
    %22 = vector.broadcast %21 : vector<16x1xi32> to vector<16x128xi32>
    %23 = arith.cmpi eq, %22, %1 : vector<16x128xi32>
    %24 = arith.extui %23 : vector<16x128xi1> to vector<16x128xi32>
    %25 = arith.sitofp %24 : vector<16x128xi32> to vector<16x128xf32>
    %26 = arith.addf %20, %25 : vector<16x128xf32>
    %c0_1 = arith.constant 0 : index
    %c0_2 = arith.constant 0 : index
    %27 = vector.load %arg2[%c0_1, %c0_2] : memref<128x16xf32, #tpu.memory_space<vmem>>, vector<128x16xf32>
    %cst_3 = arith.constant dense<0.000000e+00> : vector<16x16xf32>
    %28 = tpu.matmul %26, %27, %cst_3 {dimension_numbers = #tpu.dot_dimension_numbers<[1], [0], [0], [1], [0, 0, 1, 1], [], []>} : vector<16x128xf32>, vector<128x16xf32>, vector<16x16xf32> -> vector<16x16xf32>
    %c0_4 = arith.constant 0 : index
    %c0_5 = arith.constant 0 : index
    %29 = vector.load %arg3[%c0_4, %c0_5] : memref<128x16xf32, #tpu.memory_space<vmem>>, vector<128x16xf32>
    %cst_6 = arith.constant dense<0.000000e+00> : vector<16x128xf32>
    %30 = tpu.matmul %28, %29, %cst_6 {dimension_numbers = #tpu.dot_dimension_numbers<[1], [1], [0], [0], [0, 0, 1, 0], [], []>} : vector<16x16xf32>, vector<128x16xf32>, vector<16x128xf32> -> vector<16x128xf32>
    %c0_7 = arith.constant 0 : index
    %c0_8 = arith.constant 0 : index
    %31 = vector.load %arg4[%c0_7, %c0_8] : memref<1x128xf32, #tpu.memory_space<vmem>>, vector<1x128xf32>
    %32 = vector.broadcast %31 : vector<1x128xf32> to vector<16x128xf32>
    %33 = arith.addf %30, %32 : vector<16x128xf32>
    %cst_9 = arith.constant dense<0xFF800000> : vector<16xf32>
    %34 = vector.multi_reduction <maximumf>, %33, %cst_9 [1] : vector<16x128xf32> to vector<16xf32>
    %35 = vector.shape_cast %34 : vector<16xf32> to vector<16x1xf32>
    %36 = vector.broadcast %35 : vector<16x1xf32> to vector<16x128xf32>
    %37 = arith.subf %33, %36 : vector<16x128xf32>
    %38 = math.exp %37 : vector<16x128xf32>
    %cst_10 = arith.constant dense<0.000000e+00> : vector<16xf32>
    %39 = vector.multi_reduction <add>, %38, %cst_10 [1] : vector<16x128xf32> to vector<16xf32>
    %40 = vector.shape_cast %39 : vector<16xf32> to vector<16x1xf32>
    %41 = math.log %40 : vector<16x1xf32>
    %42 = vector.broadcast %41 : vector<16x1xf32> to vector<16x128xf32>
    %43 = arith.subf %37, %42 : vector<16x128xf32>
    %c0_11 = arith.constant 0 : index
    %c0_12 = arith.constant 0 : index
    %44 = vector.load %arg5[%c0_11, %c0_12] : memref<16x128xf32, #tpu.memory_space<vmem>>, vector<16x128xf32>
    tpu.vector_store %arg5[%c0_11, %c0_12], %43 {strides = array<i32>} : memref<16x128xf32, #tpu.memory_space<vmem>>, vector<16x128xf32>,
    return
  }
  func.func @transform_0(%arg0: i32) -> (i32, i32) {
    %c0_i32 = arith.constant 0 : i32
    %c0_i32_0 = arith.constant 0 : i32
    return %arg0, %c0_i32 : i32, i32
  }
  func.func @transform_1(%arg0: i32) -> (i32, i32) {
    %c0_i32 = arith.constant 0 : i32
    %c0_i32_0 = arith.constant 0 : i32
    %c0_i32_1 = arith.constant 0 : i32
    return %c0_i32, %c0_i32_0 : i32, i32
  }
  func.func @transform_2(%arg0: i32) -> (i32, i32) {
    %c0_i32 = arith.constant 0 : i32
    %c0_i32_0 = arith.constant 0 : i32
    %c0_i32_1 = arith.constant 0 : i32
    return %c0_i32, %c0_i32_0 : i32, i32
  }
  func.func @transform_3(%arg0: i32) -> (i32, i32) {
    %c0_i32 = arith.constant 0 : i32
    %c0_i32_0 = arith.constant 0 : i32
    %c0_i32_1 = arith.constant 0 : i32
    return %c0_i32, %c0_i32_0 : i32, i32
  }
  func.func @transform_4(%arg0: i32) -> (i32, i32) {
    %c0_i32 = arith.constant 0 : i32
    %c0_i32_0 = arith.constant 0 : i32
    return %arg0, %c0_i32 : i32, i32
  }
}

</mosaic_0001>

<bundles_post_ra>
// kernel: cbow_forward.1
= control target key start
LH: loop header
LB: loop body
LE: loop exit
PB: predicated region body
PF: predicated region fallthrough
CT: control target
= control target key end

     0   :  { %v621_v2 = vmov 0   ;;  %s811_s0 = inlined_call_operand.vmem [shape: s32[16,4], index: 0, kind: input, shape index: {}]   ;;  %s812_s1 = inlined_call_operand.vmem [shape: f32[128,16], index: 1, kind: input, shape index: {}]   ;;  %s813_s2 = inlined_call_operand.vmem [shape: f32[128,16], index: 2, kind: input, shape index: {}]   ;;  %s814_s3 = inlined_call_operand.vmem [shape: f32[1,128], index: 3, kind: input, shape index: {}]   ;;  %s815_s4 = inlined_call_operand.hbm [shape: f32[16,128], index: 4, kind: output, shape index: {}]  }
   0x1   :  { %v19_v0 = vld [vmem:[%s811_s0 + $0x8] sm:$0xff]  ;;  %v18_v1 = vld [vmem:[%s811_s0] sm:$0xff]  ;;  %583 = vset.pattern.permute.xlu1 %v621_v2  ;;  %581 = vset.pattern.permute.xlu0 %v621_v2  ;;  %v80_v5 = vld [vmem:[%s812_s1 + $0x10] sm:$0xff] }
   0x2   :  { %v78_v3 = vld [vmem:[%s812_s1] sm:$0xff]  ;;  %v79_v4 = vld [vmem:[%s812_s1 + $0x8] sm:$0xff]  ;;  %26 = vperm.xlu1 %583, %v19_v0   ;;  %23 = vperm.xlu0 %581, %v18_v1   ;;  %v81_v7 = vld [vmem:[%s812_s1 + $0x18] sm:$0xff] }
   0x3   :  { %v493_v6 = vpack.c.bf16 %v79_v4, %v78_v3  ;;  %v82_v8 = vld [vmem:[%s812_s1 + $0x20] sm:$0xff]  ;;  %v83_v9 = vld [vmem:[%s812_s1 + $0x28] sm:$0xff] }
   0x4   :  { %9 = vsyncpa [#allocation3], 0  ;;  %v497_v10 = vpack.c.bf16 %v81_v7, %v80_v5  ;;  %v622_v11 = vmov 1   ;;  %v501_v12 = vpack.c.bf16 %v83_v9, %v82_v8  ;;  %v84_v13 = vld [vmem:[%s812_s1 + $0x30] sm:$0xff]  ;;  %v85_v14 = vld [vmem:[%s812_s1 + $0x38] sm:$0xff]  ;;  %v623_v16 = vmov 2  }
   0x5   :  { %494 = vmatprep.subr.bf16.mxu0 %v493_v6  ;;  %v505_v15 = vpack.c.bf16 %v85_v14, %v84_v13  ;;  %v86_v17 = vld [vmem:[%s812_s1 + $0x40] sm:$0xff]  ;;  %v87_v18 = vld [vmem:[%s812_s1 + $0x48] sm:$0xff]  ;;  %v88_v20 = vld [vmem:[%s812_s1 + $0x50] sm:$0xff]  ;;  %v624_v22 = vmov 3   ;;  %vm192_vm0 = vcmask 130048   ;;  %v20_v55 = vlaneseq }
   0x6   :  { %496 = vmatpush3.bf16.msra.mxu0 %v493_v6  ;;  %584 = vset.pattern.permute.xlu1 %v622_v11  ;;  %v509_v19 = vpack.c.bf16 %v87_v18, %v86_v17  ;;  %v89_v21 = vld [vmem:[%s812_s1 + $0x58] sm:$0xff]  ;;  %v90_v24 = vld [vmem:[%s812_s1 + $0x60] sm:$0xff]  ;;  %v91_v25 = vld [vmem:[%s812_s1 + $0x68] sm:$0xff]  ;;  %v625_v61 = vmov 0.0  }
   0x7   :  { %582 = vset.pattern.permute.xlu0 %v622_v11  ;;  %40 = vperm.xlu1 %584, %v19_v0   ;;  %v513_v23 = vpack.c.bf16 %v89_v21, %v88_v20  ;;  %v517_v26 = vpack.c.bf16 %v91_v25, %v90_v24  ;;  %v92_v27 = vld [vmem:[%s812_s1 + $0x70] sm:$0xff]  ;;  %v93_v28 = vld [vmem:[%s812_s1 + $0x78] sm:$0xff]  ;;  %v169_v29 = vld [vmem:[%s813_s2] sm:$0xff]  ;;  %v21_v58 = vand.u32 127, %v20_v55 }
   0x8   :  { %37 = vperm.xlu0 %582, %v18_v1   ;;  %498 = vmatprep.subr.bf16.mxu0 %v497_v10  ;;  %v170_v30 = vld [vmem:[%s813_s2 + $0x8] sm:$0xff]  ;;  %v171_v31 = vld [vmem:[%s813_s2 + $0x10] sm:$0xff]  ;;  %v521_v32 = vpack.c.bf16 %v93_v28, %v92_v27  ;;  %vm719_vm1 = vmpackc.low %vm192_vm0, %vm192_vm0 }
   0x9   :  { %v525_v33 = vpack.c.bf16 %v170_v30, %v169_v29  ;;  %v172_v35 = vld [vmem:[%s813_s2 + $0x18] sm:$0xff]  ;;  %v173_v37 = vld [vmem:[%s813_s2 + $0x20] sm:$0xff]  ;;  %v174_v38 = vld [vmem:[%s813_s2 + $0x28] sm:$0xff] }
   0xa   :  { %500 = vmatpush3.bf16.msra.mxu0 %v497_v10  ;;  %v531_v36 = vpack.c.bf16 %v172_v35, %v171_v31  ;;  %v537_v39 = vpack.c.bf16 %v174_v38, %v173_v37  ;;  %v175_v40 = vld [vmem:[%s813_s2 + $0x30] sm:$0xff]  ;;  %v176_v41 = vld [vmem:[%s813_s2 + $0x38] sm:$0xff]  ;;  %v177_v43 = vld [vmem:[%s813_s2 + $0x40] sm:$0xff] }
   0xb   :  { %502 = vmatprep.subr.bf16.mxu0 %v501_v12  ;;  %585 = vset.pattern.permute.xlu1 %v623_v16  ;;  %v543_v42 = vpack.c.bf16 %v176_v41, %v175_v40  ;;  %v178_v44 = vld [vmem:[%s813_s2 + $0x48] sm:$0xff]  ;;  %v179_v46 = vld [vmem:[%s813_s2 + $0x50] sm:$0xff]  ;;  %v180_v47 = vld [vmem:[%s813_s2 + $0x58] sm:$0xff] }
   0xc   :  { %586 = vset.pattern.permute.xlu0 %v623_v16  ;;  %51 = vperm.xlu1 %585, %v18_v1   ;;  %v549_v45 = vpack.c.bf16 %v178_v44, %v177_v43  ;;  %v555_v48 = vpack.c.bf16 %v180_v47, %v179_v46  ;;  %v181_v49 = vld [vmem:[%s813_s2 + $0x60] sm:$0xff]  ;;  %v182_v50 = vld [vmem:[%s813_s2 + $0x68] sm:$0xff]  ;;  %v183_v52 = vld [vmem:[%s813_s2 + $0x70] sm:$0xff] }
   0xd   :  { %54 = vperm.xlu0 %586, %v19_v0   ;;  %527 = vmatprep.subr.msk.bf16.mxu1 %vm719_vm1, %v525_v33  ;;  %v561_v51 = vpack.c.bf16 %v182_v50, %v181_v49  ;;  %v184_v53 = vld [vmem:[%s813_s2 + $0x78] sm:$0xff]  ;;  %v368_v18 = vld [vmem:[%s814_s3] ss:$0 sm:$0xff]  ;;  %s626_s3 = smov [#allocation2]  }
   0xe   :  { %504 = vmatpush3.bf16.msra.mxu0 %v501_v12  ;;  %530 = vmatpush3.bf16.xpose.msk.msra.mxu1 %vm719_vm1, %v525_v33  ;;  %v567_v54 = vpack.c.bf16 %v184_v53, %v183_v52  ;;  %s349_s28 = sshll.u32 %s626_s3, 4  ;;  %s350_s28 = int_to_ptr.vmem [resolvable:$true] %s349_s28 }
   0xf   :  { %506 = vmatprep.subr.bf16.mxu0 %v505_v15  ;;  %533 = vmatprep.subr.msk.bf16.mxu1 %vm719_vm1, %v531_v36  ;;  %s597_s1 = scalar_lea.vmem %s350_s28, 256  ;;  %p602_p1 = scmp.lt.s32.totalorder %s350_s28, %s350_s28 }
  0x10   :  { %587 = vset.pattern.permute.xlu1 %v624_v22  ;;  %p598_p0 = scmp.ne.s32.totalorder %s350_s28, %s597_s1  ;;  %p603_p2 = scmp.lt.s32.totalorder %s597_s1, %s597_s1 }
  0x11   :  { %588 = vset.pattern.permute.xlu0 %v624_v22  ;;  %65 = vperm.xlu1 %587, %v18_v1  }
  0x12   :  { %508 = vmatpush3.bf16.msra.mxu0 %v505_v15  ;;  %p604_p3 = por %p603_p2, %p602_p1 }
  0x13   :  { %510 = vmatprep.subr.bf16.mxu0 %v509_v19 }
  0x14   :  { %p605_p4 = pnand %p604_p3, %p598_p0 }
  0x15   :  { %68 = vperm.xlu1 %587, %v19_v0  }
  0x16   :  { %512 = vmatpush3.bf16.msra.mxu0 %v509_v19  ;;  %536 = vmatpush3.bf16.xpose.msk.msra.mxu1 %vm719_vm1, %v531_v36 }
  0x17   :  { %514 = vmatprep.subr.bf16.mxu0 %v513_v23  ;;  %539 = vmatprep.subr.msk.bf16.mxu1 %vm719_vm1, %v537_v39 }
  0x1a   :  { %516 = vmatpush3.bf16.msra.mxu0 %v513_v23 }
  0x1b   :  { %518 = vmatprep.subr.bf16.mxu0 %v517_v26 }
  0x1e   :  { %520 = vmatpush3.bf16.msra.mxu0 %v517_v26  ;;  %542 = vmatpush3.bf16.xpose.msk.msra.mxu1 %vm719_vm1, %v537_v39 }
  0x1f   :  { %522 = vmatprep.subr.bf16.mxu0 %v521_v32  ;;  %545 = vmatprep.subr.msk.bf16.mxu1 %vm719_vm1, %v543_v42 }
  0x22   :  { %524 = vmatpush3.bf16.msra.mxu0 %v521_v32 }
  0x26   :  { %548 = vmatpush3.bf16.xpose.msk.msra.mxu1 %vm719_vm1, %v543_v42 }
  0x27   :  { %551 = vmatprep.subr.msk.bf16.mxu1 %vm719_vm1, %v549_v45 }
  0x2e   :  { %554 = vmatpush3.bf16.xpose.msk.msra.mxu1 %vm719_vm1, %v549_v45 }
  0x2f   :  { %557 = vmatprep.subr.msk.bf16.mxu1 %vm719_vm1, %v555_v48 }
  0x36   :  { %560 = vmatpush3.bf16.xpose.msk.msra.mxu1 %vm719_vm1, %v555_v48 }
  0x37   :  { %563 = vmatprep.subr.msk.bf16.mxu1 %vm719_vm1, %v561_v51 }
  0x3e   :  { %566 = vmatpush3.bf16.xpose.msk.msra.mxu1 %vm719_vm1, %v561_v51 }
  0x3f   :  { %569 = vmatprep.subr.msk.bf16.mxu1 %vm719_vm1, %v567_v54 }
  0x46   :  { %572 = vmatpush3.bf16.xpose.msk.msra.mxu1 %vm719_vm1, %v567_v54 }
  0x81   :  { %v27_v56 = vpop.permute.xlu1 %26  ;;  %v24_v57 = vpop.permute.xlu0 %23 }
  0x82   :  { %vm28_vm2 = vcmp.eq.s32.totalorder %v24_v57, %v21_v58  ;;  %vm29_vm6 = vcmp.eq.s32.totalorder %v27_v56, %v21_v58 }
  0x83   :  { %v360_v62 = vsel %vm28_vm2, 1.0, %v625_v61  ;;  %v361_v7 = vsel %vm29_vm6, 1.0, %v625_v61 }
  0x86   :  { %v41_v59 = vpop.permute.xlu1 %40 }
  0x87   :  { %v38_v60 = vpop.permute.xlu0 %37  ;;  %vm43_vm5 = vcmp.eq.s32.totalorder %v41_v59, %v21_v58 }
  0x88   :  { %vm42_vm3 = vcmp.eq.s32.totalorder %v38_v60, %v21_v58  ;;  %v363_v4 = vsel %vm43_vm5, 1.0, %v625_v61 }
  0x89   :  { %v362_v63 = vsel %vm42_vm3, 1.0, %v625_v61  ;;  %v49_v10 = vadd.f32 %v363_v4, %v361_v7 }
  0x8a   :  { %v48_v2 = vadd.f32 %v362_v63, %v360_v62 }
  0x8b   :  { %v52_v0 = vpop.permute.xlu1 %51 }
  0x8c   :  { %vm56_vm4 = vcmp.eq.s32.totalorder %v52_v0, %v21_v58  ;;  %v55_v1 = vpop.permute.xlu0 %54 }
  0x8d   :  { %v364_v3 = vsel %vm56_vm4, 1.0, %v625_v61  ;;  %vm57_vm7 = vcmp.eq.s32.totalorder %v55_v1, %v21_v58 }
  0x8e   :  { %v62_v6 = vadd.f32 %v364_v3, %v48_v2  ;;  %v365_v8 = vsel %vm57_vm7, 1.0, %v625_v61 }
  0x8f   :  { %v63_v13 = vadd.f32 %v365_v8, %v49_v10 }
  0x90   :  { %v66_v5 = vpop.permute.xlu1 %65 }
  0x91   :  { %vm70_vm8 = vcmp.eq.s32.totalorder %v66_v5, %v21_v58 }
  0x92   :  { %v366_v9 = vsel %vm70_vm8, 1.0, %v625_v61 }
  0x93   :  { %v76_v11 = vadd.f32 %v366_v9, %v62_v6 }
  0x94   :  { %v69_v12 = vpop.permute.xlu1 %68 }
  0x95   :  { %vm71_vm9 = vcmp.eq.s32.totalorder %v69_v12, %v21_v58  ;;  %455 = vmatprep.mubr.f32.mxu0 %v76_v11 }
  0x96   :  { %v367_v14 = vsel %vm71_vm9, 1.0, %v625_v61 }
  0x97   :  { %v77_v15 = vadd.f32 %v367_v14, %v63_v13 }
  0x99   :  { %456 = vmatmul.mubr.f32.vlgmr.msra.gmra.mrb[0].mxu0 %v77_v15 }
 0x16c   :  { %v457_v16 = vpop.f32.mrb[0].mxu0 }
 0x16d   :  { %v160_v17 = vpop.f32.mrb[1].mxu0 }
 0x16e   :  { %490 = vmatprep.mubr.msk.f32.mxu1 %vm192_vm0, %v160_v17 }
 0x16f   :  { %491 = vmatmul.mubr.msk.f32.vlgmr.msra.gmra.mrb[0].mxu1 %vm192_vm0, %v457_v16 }
 0x242   :  { %v492_v19 = vpop.f32.mrb[0].mxu1 }
 0x243   :  { %v319_v20 = vadd.f32 %v492_v19, %v368_v18  ;;  %v313_v21 = vpop.f32.mrb[1].mxu1 }
 0x244   :  { %v314_v22 = vadd.f32 %v368_v18, %v313_v21 }
 0x245   :  { %324 = vmax.xlane.f32.xlu1 %v319_v20 }
 0x246   :  { %322 = vmax.xlane.f32.xlu0 %v314_v22 }
 0x2d2   :  { %v325_v23 = vpop.xlane.xlu1 %324 }
 0x2d3   :  { %v323_v24 = vpop.xlane.xlu0 %322  ;;  %v327_v25 = vsub.f32 %v319_v20, %v325_v23 }
 0x2d4   :  { %v326_v26 = vsub.f32 %v314_v22, %v323_v24 }
 0x2d5   :  { %v330_v28 = vmul.f32 1.442695, %v327_v25 }
 0x2d6   :  { %v328_v27 = vmul.f32 1.442695, %v326_v26 }
 0x2d8   :  { %589 = vpow2.f32 %v328_v27 }
 0x2d9   :  { %591 = vpow2.f32 %v330_v28 }
 0x2e2   :  { %v590_v29 = vpop.eup %589 }
 0x2e3   :  { %332 = vadd.xlane.f32.xlu0 %v590_v29  ;;  %v592_v30 = vpop.eup %591 }
 0x2e7   :  { %334 = vadd.xlane.f32.xlu0 %v592_v30 }
 0x370   :  { %v333_v31 = vpop.xlane.xlu0 %332 }
 0x371   :  { %593 = vlog2.f32 %v333_v31 }
 0x374   :  { %v335_v32 = vpop.xlane.xlu0 %334 }
 0x375   :  { %595 = vlog2.f32 %v335_v32 }
 0x37b   :  { %v594_v33 = vpop.eup %593 }
 0x37c   :  { %v337_v34 = vmul.f32 0.6931472, %v594_v33 }
 0x37e   :  { %v340_v35 = vsub.f32 %v326_v26, %v337_v34 }
 0x37f   :  { %v596_v36 = vpop.eup %595 }
 0x380   :  { %342 = vst [vmem:[#allocation2] sm:$0xff] %v340_v35  ;;  %v339_v37 = vmul.f32 0.6931472, %v596_v36 }
 0x382   :  { %v341_v38 = vsub.f32 %v327_v25, %v339_v37 }
 0x384   :  { %343 = vst [vmem:[#allocation2 + $0x8] sm:$0xff] %v341_v38 }
 0x385   :  { %608 = shalt.err (!%p605_p4)
}
 0x386   :  { %s609_s5 = scalar_lea.hbm %s815_s4, 256 }
 0x387   :  { %p610_p5 = scmp.ne.s32.totalorder %s815_s4, %s609_s5  ;;  %p613_p6 = scmp.lt.u32.totalorder %s609_s5, %s815_s4 }
 0x389   :  { %p615_p7 = pnand %p613_p6, %p610_p5 }
 0x38b   :  { %618 = shalt.err (!%p615_p7)
}
 0x38c   :  { %s627_s10 = smov 128   ;;  %s628_s11 = smov 8  }
 0x38d   :  { %355 = dma.vmem_to_hbm [thread:$0]  %s350_s28, 256, %s815_s4, [#allocation3], %s627_s10, %s627_s10, %s628_s11  }
 0x38e   :  { %619 = dma.done.wait [#allocation3], 256  }
 0x38f   :  { %620 = vsyncadd [#allocation3], 4294967040 }
 0x390   :  { %359 = vsyncpa [#allocation3], 1 }

</bundles_post_ra>
